<compile_context>
chip_gen: v7x
topology: tpu7x:2x2x1
jax: 0.10.0
libtpu: 0.0.40
codegen_flags: <defaults>
</compile_context>

<pallas_src>
import numpy as np
import jax
import jax.numpy as jnp
from jax import lax
from jax.experimental import pallas as pl
from jax.experimental.pallas import tpu as pltpu


# ---------------------------------------------------------------------------
# Kernels
# ---------------------------------------------------------------------------

def _l2_kernel(frow_ref, fcolt_ref, sqcol_ref, out_ref):
    tm = frow_ref.shape[0]
    tn = fcolt_ref.shape[1]

    fr = frow_ref[...]                         # (tm, D)  native dtype -> MXU
    fct = fcolt_ref[...]                       # (D, tn)  native dtype -> MXU
    # Gram tile on the MXU: gram[i, j] = f_i . f_j   (RHS already (K, N)).
    gram = lax.dot_general(
        fr, fct, (((1,), (0,)), ((), ())), preferred_element_type=jnp.float32
    )                                          # (tm, tn) f32

    # Row squared-norms: tiny O(tm*D) VPU/XLU work per step.
    fr32 = fr.astype(jnp.float32)
    sq_r = jnp.sum(fr32 * fr32, axis=-1, keepdims=True)        # (tm, 1)
    # Column squared-norms: precomputed once in the wrapper, plain VPU add.
    sq_c = sqcol_ref[...]                                       # (1, tn) f32

    sq_dist = jnp.maximum(sq_r + sq_c - 2.0 * gram, 0.0)
    dist = jnp.sqrt(sq_dist)

    # Exact zeros on the diagonal (matches torch: norm of the zero vector).
    row_ids = pl.program_id(0) * tm + lax.broadcasted_iota(jnp.int32, (tm, tn), 0)
    col_ids = pl.program_id(1) * tn + lax.broadcasted_iota(jnp.int32, (tm, tn), 1)
    dist = jnp.where(row_ids == col_ids, 0.0, dist)

    out_ref[...] = (-dist).astype(out_ref.dtype)


def _cos_kernel(frow_ref, fcolt_ref, out_ref):
    # Inputs are pre-normalized in the wrapper; just a negated Gram matmul.
    gram = lax.dot_general(
        frow_ref[...], fcolt_ref[...], (((1,), (0,)), ((), ())),
        preferred_element_type=jnp.float32,
    )
    out_ref[...] = (-gram).astype(out_ref.dtype)


# ---------------------------------------------------------------------------
# Tiling heuristics
# ---------------------------------------------------------------------------

def _pick_tile(n_pad, cap):
    """Largest tile that divides n_pad, is lane/sublane legal, and <= cap."""
    best = 128
    for c in (128, 256, 512, 1024, 2048, 4096, n_pad):
        if c <= cap and n_pad % c == 0:
            best = max(best, c)
    return min(best, n_pad)


def _choose_tiles(n_pad, d, in_bytes, out_bytes):
    tm = _pick_tile(n_pad, 1024)   # row (anchor) tile
    tn = _pick_tile(n_pad, 2048)   # column tile (lane axis of the output)

    # Keep >= 2 row blocks so v7x's two TensorCores both get work.
    if n_pad // tm < 2 and n_pad >= 256:
        tm = n_pad // 2            # divides n_pad; multiple of 64 >= 8

    # Conservative per-call VMEM budget that fits every generation
    # (v7x: 64 MiB / TensorCore; v5e/v6e: 128 MiB).
    budget = 32 * 1024 * 1024

    def cost(tm_, tn_):
        return (2 * tm_ * d * in_bytes          # frow, double-buffered
                + 2 * d * tn_ * in_bytes        # fcol^T, double-buffered
                + 2 * 8 * tn_ * 4               # sq_col row (sublane-padded)
                + 2 * tm_ * tn_ * out_bytes     # output slab, double-buffered
                + 2 * tm_ * tn_ * 4)            # f32 intermediates headroom

    while cost(tm, tn) > budget and (tm > 128 or tn > 128):
        if tn >= tm and tn > 128:
            tn = _pick_tile(n_pad, tn // 2)
        elif tm > 128:
            tm = _pick_tile(n_pad, tm // 2)
        else:
            break
    return tm, tn


# ---------------------------------------------------------------------------
# Wrapper
# ---------------------------------------------------------------------------

def feature_similarity(features, similarity_type="l2"):
    """FeatureSimilarity forward.  features: [N, D] -> [N, N]."""
    if similarity_type not in ("l2", "cos_sim"):
        raise ValueError(similarity_type)
    features = jnp.asarray(features)
    n, d = features.shape
    out_dtype = features.dtype

    # Pad N to a multiple of 128 for lane-dense blocks; skip when aligned.
    n_pad = int(pl.cdiv(n, 128)) * 128
    if n_pad == n:
        f_pad = features
    else:
        f_pad = jnp.zeros((n_pad, d), features.dtype).at[:n, :].set(features)

    in_bytes = jnp.dtype(f_pad.dtype).itemsize
    out_bytes = jnp.dtype(out_dtype).itemsize
    tm, tn = _choose_tiles(n_pad, d, in_bytes, out_bytes)
    grid = (n_pad // tm, n_pad // tn)

    compiler_params = pltpu.CompilerParams(
        dimension_semantics=("parallel", "parallel"),
        vmem_limit_bytes=48 * 1024 * 1024,
    )

    if similarity_type == "l2":
        f32 = f_pad.astype(jnp.float32)
        sq_col = jnp.sum(f32 * f32, axis=-1)[None, :]      # (1, n_pad) f32, once
        f_t = f_pad.T                                       # (d, n_pad): MXU (K, N)
        out = pl.pallas_call(
            _l2_kernel,
            out_shape=jax.ShapeDtypeStruct((n_pad, n_pad), out_dtype),
            grid=grid,
            in_specs=[
                pl.BlockSpec((tm, d), lambda i, j: (i, 0)),   # anchor row block
                pl.BlockSpec((d, tn), lambda i, j: (0, j)),   # transposed col block
                pl.BlockSpec((1, tn), lambda i, j: (0, j)),   # column sq-norms
            ],
            out_specs=pl.BlockSpec((tm, tn), lambda i, j: (i, j)),
            compiler_params=compiler_params,
        )(f_pad, f_t, sq_col)
    else:  # cos_sim
        # F.cosine_similarity clamps each norm at eps=1e-8; normalize ONCE here
        # (f32 math), then cast back to the input dtype for full MXU throughput.
        f32 = f_pad.astype(jnp.float32)
        norm = jnp.sqrt(jnp.sum(f32 * f32, axis=-1, keepdims=True))
        f_n = (f32 / jnp.maximum(norm, 1e-8)).astype(f_pad.dtype)
        out = pl.pallas_call(
            _cos_kernel,
            out_shape=jax.ShapeDtypeStruct((n_pad, n_pad), out_dtype),
            grid=grid,
            in_specs=[
                pl.BlockSpec((tm, d), lambda i, j: (i, 0)),
                pl.BlockSpec((d, tn), lambda i, j: (0, j)),
            ],
            out_specs=pl.BlockSpec((tm, tn), lambda i, j: (i, j)),
            compiler_params=compiler_params,
        )(f_n, f_n.T)

    if n_pad == n:
        return out            # no extra HBM round-trip for the slice
    return out[:n, :n]


# ---------------------------------------------------------------------------
# Self-test
# ---------------------------------------------------------------------------

def _ref_l2(f):
    return -np.linalg.norm(f[:, None, :] - f[None, :, :], axis=-1)


def _ref_cos(f):
    fn = f / np.maximum(np.linalg.norm(f, axis=-1, keepdims=True), 1e-8)
    return -(fn @ fn.T)


if __name__ == "__main__":
    key = jax.random.PRNGKey(0)

    # Small unaligned case (exercises padding + slice path), grid (1, 1).
    n1, d1 = 8, 32
    feats1 = jax.random.normal(key, (n1, d1), dtype=jnp.float32)
    # Aligned case (no pad / no slice), multi-block grid (2, 2).
    n2, d2 = 256, 64
    feats2 = jax.random.normal(jax.random.PRNGKey(1), (n2, d2), dtype=jnp.float32)

    ok = True
    for feats, n in ((feats1, n1), (feats2, n2)):
        sim_l2 = jax.block_until_ready(feature_similarity(feats, "l2"))
        sim_cos = jax.block_until_ready(feature_similarity(feats, "cos_sim"))

        f = np.asarray(feats, dtype=np.float64)
        ref_l2 = _ref_l2(f)
        ref_cos = _ref_cos(f)

        ok &= sim_l2.shape == (n, n) and sim_cos.shape == (n, n)
        ok &= np.allclose(np.asarray(sim_l2), ref_l2, rtol=1e-3, atol=1e-3)
        ok &= np.allclose(np.asarray(sim_cos), ref_cos, rtol=1e-3, atol=1e-3)

    assert ok, "mismatch vs. reference"
    print("KERNEL_OK")
</pallas_src>

<mosaic_0001>
module attributes {stable_mosaic.version = 11 : i64} {
  func.func @_l2_kernel(%arg0: i32, %arg1: i32, %arg2: memref<128x32xf32, #tpu.memory_space<vmem>>, %arg3: memref<32x128xf32, #tpu.memory_space<vmem>>, %arg4: memref<1x128xf32, #tpu.memory_space<vmem>>, %arg5: memref<128x128xf32, #tpu.memory_space<vmem>>) attributes {dimension_semantics = [#tpu.dimension_semantics<parallel>, #tpu.dimension_semantics<parallel>], iteration_bounds = array<i64: 1, 1>, scalar_prefetch = 0 : i64, scratch_operands = 0 : i64, tpu.core_type = #tpu.core_type<tc>, window_params = [{transform_indices = @transform_0, window_bounds = array<i64: 128, 32>}, {transform_indices = @transform_1, window_bounds = array<i64: 32, 128>}, {transform_indices = @transform_2, window_bounds = array<i64: 1, 128>}, {transform_indices = @transform_3, window_bounds = array<i64: 128, 128>}]} {
    %c0 = arith.constant 0 : index
    %c0_0 = arith.constant 0 : index
    %0 = vector.load %arg2[%c0, %c0_0] : memref<128x32xf32, #tpu.memory_space<vmem>>, vector<128x32xf32>
    %c0_1 = arith.constant 0 : index
    %c0_2 = arith.constant 0 : index
    %1 = vector.load %arg3[%c0_1, %c0_2] : memref<32x128xf32, #tpu.memory_space<vmem>>, vector<32x128xf32>
    %cst = arith.constant dense<0.000000e+00> : vector<128x128xf32>
    %2 = tpu.matmul %0, %1, %cst {dimension_numbers = #tpu.dot_dimension_numbers<[1], [0], [0], [1], [0, 0, 1, 1], [], []>} : vector<128x32xf32>, vector<32x128xf32>, vector<128x128xf32> -> vector<128x128xf32>
    %3 = arith.mulf %0, %0 : vector<128x32xf32>
    %cst_3 = arith.constant dense<0.000000e+00> : vector<128xf32>
    %4 = vector.multi_reduction <add>, %3, %cst_3 [1] : vector<128x32xf32> to vector<128xf32>
    %5 = vector.shape_cast %4 : vector<128xf32> to vector<128x1xf32>
    %c0_4 = arith.constant 0 : index
    %c0_5 = arith.constant 0 : index
    %6 = vector.load %arg4[%c0_4, %c0_5] : memref<1x128xf32, #tpu.memory_space<vmem>>, vector<1x128xf32>
    %7 = vector.broadcast %5 : vector<128x1xf32> to vector<128x128xf32>
    %8 = vector.broadcast %6 : vector<1x128xf32> to vector<128x128xf32>
    %9 = arith.addf %7, %8 : vector<128x128xf32>
    %cst_6 = arith.constant 2.000000e+00 : f32
    %10 = vector.broadcast %cst_6 : f32 to vector<128x128xf32>
    %11 = arith.mulf %10, %2 : vector<128x128xf32>
    %12 = arith.subf %9, %11 : vector<128x128xf32>
    %cst_7 = arith.constant 0.000000e+00 : f32
    %13 = vector.broadcast %cst_7 : f32 to vector<128x128xf32>
    %14 = arith.maximumf %12, %13 : vector<128x128xf32>
    %15 = math.sqrt %14 : vector<128x128xf32>
    %c128_i32 = arith.constant 128 : i32
    %16 = arith.muli %arg0, %c128_i32 : i32
    %17 = tpu.iota {dimensions = array<i32: 0>} : vector<128x128xi32>
    %18 = vector.broadcast %16 : i32 to vector<128x128xi32>
    %19 = arith.addi %18, %17 : vector<128x128xi32>
    %c128_i32_8 = arith.constant 128 : i32
    %20 = arith.muli %arg1, %c128_i32_8 : i32
    %21 = tpu.iota {dimensions = array<i32: 1>} : vector<128x128xi32>
    %22 = vector.broadcast %20 : i32 to vector<128x128xi32>
    %23 = arith.addi %22, %21 : vector<128x128xi32>
    %24 = arith.cmpi eq, %19, %23 : vector<128x128xi32>
    %cst_9 = arith.constant 0.000000e+00 : f32
    %25 = vector.broadcast %cst_9 : f32 to vector<128x128xf32>
    %26 = arith.select %24, %25, %15 : vector<128x128xi1>, vector<128x128xf32>
    %cst_10 = arith.constant 0.000000e+00 : f32
    %27 = vector.broadcast %cst_10 : f32 to vector<128x128xf32>
    %28 = arith.subf %27, %26 : vector<128x128xf32>
    %c0_11 = arith.constant 0 : index
    %c0_12 = arith.constant 0 : index
    %29 = vector.load %arg5[%c0_11, %c0_12] : memref<128x128xf32, #tpu.memory_space<vmem>>, vector<128x128xf32>
    tpu.vector_store %arg5[%c0_11, %c0_12], %28 {strides = array<i32>} : memref<128x128xf32, #tpu.memory_space<vmem>>, vector<128x128xf32>,
    return
  }
  func.func @transform_0(%arg0: i32, %arg1: i32) -> (i32, i32) {
    %c0_i32 = arith.constant 0 : i32
    %c0_i32_0 = arith.constant 0 : i32
    return %arg0, %c0_i32 : i32, i32
  }
  func.func @transform_1(%arg0: i32, %arg1: i32) -> (i32, i32) {
    %c0_i32 = arith.constant 0 : i32
    %c0_i32_0 = arith.constant 0 : i32
    return %c0_i32, %arg1 : i32, i32
  }
  func.func @transform_2(%arg0: i32, %arg1: i32) -> (i32, i32) {
    %c0_i32 = arith.constant 0 : i32
    %c0_i32_0 = arith.constant 0 : i32
    return %c0_i32, %arg1 : i32, i32
  }
  func.func @transform_3(%arg0: i32, %arg1: i32) -> (i32, i32) {
    %c0_i32 = arith.constant 0 : i32
    return %arg0, %arg1 : i32, i32
  }
}

</mosaic_0001>

<bundles_post_ra>
// kernel: tpu_custom_call.1
= control target key start
LH: loop header
LB: loop body
LE: loop exit
PB: predicated region body
PF: predicated region fallthrough
CT: control target
= control target key end

     0   :  { %vm35_vm0 = vcmask 261120   ;;  %s1176_s0 = inlined_call_operand.vmem [shape: f32[128,32], index: 0, kind: input, shape index: {}]   ;;  %s1177_s1 = inlined_call_operand.vmem [shape: f32[32,128], index: 1, kind: input, shape index: {}]   ;;  %s1178_s2 = inlined_call_operand.vmem [shape: f32[1,128], index: 2, kind: input, shape index: {}]   ;;  %s1179_s3 = inlined_call_operand.hbm [shape: f32[128,128], index: 3, kind: output, shape index: {}]  }
   0x1   :  { %v31_v0 = vld [vmem:[%s1177_s1] sm:$0xff]  ;;  %v32_v1 = vld [vmem:[%s1177_s1 + $0x8] sm:$0xff]  ;;  %v33_v2 = vld [vmem:[%s1177_s1 + $0x10] sm:$0xff] }
   0x2   :  { %v665_v3 = vpack.c.bf16 %v32_v1, %v31_v0  ;;  %v34_v4 = vld [vmem:[%s1177_s1 + $0x18] sm:$0xff]  ;;  %v15_v5 = vld [vmem:[%s1176_s0] sm:$0xff]  ;;  %v16_v9 = vld [vmem:[%s1176_s0 + $0x8] sm:$0xff] }
   0x3   :  { %v23_v6 = vld [vmem:[%s1176_s0 + $0x40] sm:$0xff]  ;;  %v669_v7 = vpack.c.bf16 %v34_v4, %v33_v2  ;;  %641 = vmatprep.mubr.msk.f32.mxu0 %vm35_vm0, %v15_v5  ;;  %v229_v8 = vmul.f32 %v15_v5, %v15_v5  ;;  %v17_v10 = vld [vmem:[%s1176_s0 + $0x10] sm:$0xff]  ;;  %v18_v11 = vld [vmem:[%s1176_s0 + $0x18] sm:$0xff]  ;;  %v230_v13 = vmul.f32 %v16_v9, %v16_v9 }
   0x4   :  { %653 = vmatprep.mubr.msk.f32.mxu1 %vm35_vm0, %v23_v6  ;;  %666 = vmatprep.subr.bf16.mxu0 %v665_v3  ;;  %v231_v12 = vmul.f32 %v17_v10, %v17_v10  ;;  %v232_v15 = vmul.f32 %v18_v11, %v18_v11  ;;  %v19_v17 = vld [vmem:[%s1176_s0 + $0x20] sm:$0xff]  ;;  %v20_v18 = vld [vmem:[%s1176_s0 + $0x28] sm:$0xff] }
   0x5   :  { %673 = vmatprep.subr.bf16.mxu1 %v665_v3  ;;  %668 = vmatpush3.bf16.msra.mxu0 %v665_v3  ;;  %v245_v14 = vsel %vm35_vm0, %v229_v8, 0.0  ;;  %v248_v20 = vsel %vm35_vm0, %v230_v13, 0.0  ;;  %v234_v21 = vmul.f32 %v20_v18, %v20_v18  ;;  %v233_v22 = vmul.f32 %v19_v17, %v19_v17 }
   0x6   :  { %675 = vmatpush3.bf16.msra.mxu1 %v665_v3  ;;  %670 = vmatprep.subr.bf16.mxu0 %v669_v7  ;;  %v251_v16 = vsel %vm35_vm0, %v231_v12, 0.0  ;;  %v254_v19 = vsel %vm35_vm0, %v232_v15, 0.0 }
   0x7   :  { %674 = vmatprep.subr.bf16.mxu1 %v669_v7  ;;  %252 = vadd.xlane.f32.xlu1 %v251_v16 }
   0x8   :  { %246 = vadd.xlane.f32.xlu0 %v245_v14 }
   0x9   :  { %8 = vsyncpa [#allocation3], 0  ;;  %672 = vmatpush3.bf16.msra.mxu0 %v669_v7  ;;  %v24_v23 = vld [vmem:[%s1176_s0 + $0x48] sm:$0xff]  ;;  %v25_v24 = vld [vmem:[%s1176_s0 + $0x50] sm:$0xff]  ;;  %v260_v27 = vsel %vm35_vm0, %v234_v21, 0.0  ;;  %v257_v28 = vsel %vm35_vm0, %v233_v22, 0.0  ;;  %v237_v33 = vmul.f32 %v23_v6, %v23_v6  ;;  %v477_v0 = vlaneseq }
   0xa   :  { %676 = vmatpush3.bf16.msra.mxu1 %v669_v7  ;;  %v21_v25 = vld [vmem:[%s1176_s0 + $0x30] sm:$0xff]  ;;  %v22_v26 = vld [vmem:[%s1176_s0 + $0x38] sm:$0xff]  ;;  %v27_v32 = vld [vmem:[%s1176_s0 + $0x60] sm:$0xff]  ;;  %v238_v36 = vmul.f32 %v24_v23, %v24_v23  ;;  %v239_v42 = vmul.f32 %v25_v24, %v25_v24 }
   0xb   :  { %255 = vadd.xlane.f32.xlu1 %v254_v19  ;;  %v236_v29 = vmul.f32 %v22_v26, %v22_v26  ;;  %v235_v30 = vmul.f32 %v21_v25, %v21_v25  ;;  %v26_v31 = vld [vmem:[%s1176_s0 + $0x58] sm:$0xff]  ;;  %v28_v37 = vld [vmem:[%s1176_s0 + $0x68] sm:$0xff]  ;;  %v29_v38 = vld [vmem:[%s1176_s0 + $0x70] sm:$0xff]  ;;  %v269_v40 = vsel %vm35_vm0, %v237_v33, 0.0  ;;  %v241_v47 = vmul.f32 %v27_v32, %v27_v32 }
   0xc   :  { %249 = vadd.xlane.f32.xlu0 %v248_v20  ;;  %642 = vmatmul.mubr.msk.f32.vlgmr.msra.gmra.mrb[0].mxu0 %vm35_vm0, %v16_v9  ;;  %v272_v39 = vsel %vm35_vm0, %v238_v36, 0.0  ;;  %v240_v41 = vmul.f32 %v26_v31, %v26_v31  ;;  %v30_v43 = vld [vmem:[%s1176_s0 + $0x78] sm:$0xff]  ;;  %v275_v45 = vsel %vm35_vm0, %v239_v42, 0.0  ;;  %v242_v46 = vmul.f32 %v28_v37, %v28_v37  ;;  %v860_v4 = vld [vmem:[%s1178_s2] ss:$0 sm:$0xff]  ;;  %s736_s2 = smov [#allocation2]  }
   0xd   :  { %654 = vmatmul.mubr.msk.f32.vlgmr.msra.gmra.mrb[0].mxu1 %vm35_vm0, %v24_v23  ;;  %644 = vmatprep.mubr.msk.f32.mxu0 %vm35_vm0, %v17_v10  ;;  %v266_v34 = vsel %vm35_vm0, %v236_v29, 0.0  ;;  %v263_v35 = vsel %vm35_vm0, %v235_v30, 0.0  ;;  %v281_v49 = vsel %vm35_vm0, %v241_v47, 0.0  ;;  %v244_v50 = vmul.f32 %v30_v43, %v30_v43  ;;  %s585_s25 = sshll.u32 %s736_s2, 4  ;;  %s586_s25 = int_to_ptr.vmem [resolvable:$true] %s585_s25 }
   0xe   :  { %656 = vmatprep.mubr.msk.f32.mxu1 %vm35_vm0, %v25_v24  ;;  %v278_v44 = vsel %vm35_vm0, %v240_v41, 0.0  ;;  %v284_v48 = vsel %vm35_vm0, %v242_v46, 0.0  ;;  %v243_v51 = vmul.f32 %v29_v38, %v29_v38  ;;  %v855_v3 = vshrl.u32 %v477_v0, 7  ;;  %s712_s26 = scalar_lea.vmem %s586_s25, 2048  ;;  %p717_p1 = scmp.lt.s32.totalorder %s586_s25, %s586_s25 }
   0xf   :  { %261 = vadd.xlane.f32.xlu1 %v260_v27  ;;  %v290_v52 = vsel %vm35_vm0, %v244_v50, 0.0  ;;  %v865_v6 = vand.u32 127, %v477_v0  ;;  %p713_p0 = scmp.ne.s32.totalorder %s586_s25, %s712_s26  ;;  %p718_p2 = scmp.lt.s32.totalorder %s712_s26, %s712_s26 }
  0x10   :  { %258 = vadd.xlane.f32.xlu0 %v257_v28  ;;  %645 = vmatmul.mubr.msk.f32.gmra.mrb[2].mxu0 %vm35_vm0, %v18_v11  ;;  %v287_v53 = vsel %vm35_vm0, %v243_v51, 0.0  ;;  %v863_v5 = vadd.s32 72, %v855_v3  ;;  %v869_v8 = vadd.s32 8, %v855_v3  ;;  %v872_v13 = vadd.s32 64, %v855_v3 }
  0x11   :  { %657 = vmatmul.mubr.msk.f32.gmra.mrb[2].mxu1 %vm35_vm0, %v26_v31  ;;  %647 = vmatprep.mubr.msk.f32.mxu0 %vm35_vm0, %v19_v17  ;;  %v876_v15 = vadd.s32 88, %v855_v3  ;;  %v879_v16 = vadd.s32 24, %v855_v3  ;;  %v883_v22 = vadd.s32 80, %v855_v3  ;;  %v890_v29 = vadd.s32 104, %v855_v3  ;;  %p719_p3 = por %p718_p2, %p717_p1 }
  0x12   :  { %659 = vmatprep.mubr.msk.f32.mxu1 %vm35_vm0, %v27_v32  ;;  %v893_v30 = vadd.s32 40, %v855_v3  ;;  %v899_v36 = vadd.s32 32, %v855_v3  ;;  %vm525_vm1 = vcmp.eq.s32.totalorder %v863_v5, %v865_v6  ;;  %vm517_vm4 = vcmp.eq.s32.totalorder %v869_v8, %v865_v6 }
  0x13   :  { %267 = vadd.xlane.f32.xlu1 %v266_v34  ;;  %vm524_vm6 = vcmp.eq.s32.totalorder %v872_v13, %v865_v6  ;;  %vm516_vm8 = vcmp.eq.s32.totalorder %v855_v3, %v865_v6  ;;  %vm519_vm13 = vcmp.eq.s32.totalorder %v879_v16, %v865_v6  ;;  %p720_p4 = pnand %p719_p3, %p713_p0 }
  0x14   :  { %264 = vadd.xlane.f32.xlu0 %v263_v35  ;;  %648 = vmatmul.mubr.msk.f32.gmra.mrb[4].mxu0 %vm35_vm0, %v20_v18  ;;  %v896_v35 = vadd.s32 96, %v855_v3 }
  0x15   :  { %660 = vmatmul.mubr.msk.f32.gmra.mrb[4].mxu1 %vm35_vm0, %v28_v37  ;;  %650 = vmatprep.mubr.msk.f32.mxu0 %vm35_vm0, %v21_v25 }
  0x16   :  { %662 = vmatprep.mubr.msk.f32.mxu1 %vm35_vm0, %v29_v38 }
  0x17   :  { %273 = vadd.xlane.f32.xlu1 %v272_v39 }
  0x18   :  { %270 = vadd.xlane.f32.xlu0 %v269_v40  ;;  %651 = vmatmul.mubr.msk.f32.gmra.mrb[6].mxu0 %vm35_vm0, %v22_v26  ;;  %v887_v26 = vadd.s32 16, %v855_v3 }
  0x19   :  { %663 = vmatmul.mubr.msk.f32.gmra.mrb[6].mxu1 %vm35_vm0, %v30_v43  ;;  %vm526_vm0 = vcmp.eq.s32.totalorder %v883_v22, %v865_v6 }
  0x1b   :  { %279 = vadd.xlane.f32.xlu1 %v278_v44 }
  0x1c   :  { %276 = vadd.xlane.f32.xlu0 %v275_v45 }
  0x1f   :  { %285 = vadd.xlane.f32.xlu1 %v284_v48 }
  0x20   :  { %282 = vadd.xlane.f32.xlu0 %v281_v49 }
  0x23   :  { %291 = vadd.xlane.f32.xlu1 %v290_v52 }
  0x24   :  { %288 = vadd.xlane.f32.xlu0 %v287_v53 }
  0x94   :  { %v253_v54 = vpop.xlane.xlu1 %252 }
  0x95   :  { %v247_v55 = vpop.xlane.xlu0 %246  ;;  %v302_v37 = vadd.f32 %v860_v4, %v253_v54 }
  0x96   :  { %v300_v23 = vadd.f32 %v860_v4, %v247_v55 }
  0x98   :  { %v256_v56 = vpop.xlane.xlu1 %255 }
  0x99   :  { %v250_v57 = vpop.xlane.xlu0 %249  ;;  %v303_v52 = vadd.f32 %v860_v4, %v256_v56 }
  0x9a   :  { %v301_v17 = vadd.f32 %v860_v4, %v250_v57 }
  0x9c   :  { %v262_v58 = vpop.xlane.xlu1 %261 }
  0x9d   :  { %v259_v59 = vpop.xlane.xlu0 %258  ;;  %v915_v53 = vadd.f32 %v860_v4, %v262_v58 }
  0x9e   :  { %v918_v54 = vadd.f32 %v860_v4, %v259_v59 }
  0xa0   :  { %v851_v60 = vpop.xlane.xlu1 %267 }
  0xa1   :  { %v853_v61 = vpop.xlane.xlu0 %264 }
  0xa4   :  { %v274_v62 = vpop.xlane.xlu1 %273 }
  0xa5   :  { %v271_v63 = vpop.xlane.xlu0 %270  ;;  %v309_v7 = vadd.f32 %v860_v4, %v274_v62  ;;  %v923_v62 = vadd.f32 %v860_v4, %v851_v60 }
  0xa6   :  { %v308_v14 = vadd.f32 %v860_v4, %v271_v63  ;;  %v927_v63 = vadd.f32 %v860_v4, %v853_v61 }
  0xa8   :  { %v280_v1 = vpop.xlane.xlu1 %279 }
  0xa9   :  { %v277_v2 = vpop.xlane.xlu0 %276  ;;  %v311_v40 = vadd.f32 %v860_v4, %v280_v1 }
  0xaa   :  { %v310_v46 = vadd.f32 %v860_v4, %v277_v2 }
  0xac   :  { %v286_v9 = vpop.xlane.xlu1 %285 }
  0xad   :  { %v283_v10 = vpop.xlane.xlu0 %282  ;;  %v313_v56 = vadd.f32 %v860_v4, %v286_v9 }
  0xae   :  { %v933_v59 = vadd.f32 %v860_v4, %v283_v10 }
  0xb0   :  { %v292_v50 = vpop.xlane.xlu1 %291 }
  0xb1   :  { %v289_v51 = vpop.xlane.xlu0 %288  ;;  %v936_v1 = vadd.f32 %v860_v4, %v292_v50 }
  0xb2   :  { %v939_v60 = vadd.f32 %v860_v4, %v289_v51 }
  0xdf   :  { %v643_v12 = vpop.f32.mrb[0].mxu0 }
  0xe0   :  { %v655_v11 = vpop.f32.mrb[0].mxu1  ;;  %v317_v19 = vmul.f32 2.0, %v643_v12  ;;  %v150_v21 = vpop.f32.mrb[1].mxu0 }
  0xe1   :  { %v325_v18 = vmul.f32 2.0, %v655_v11  ;;  %v190_v20 = vpop.f32.mrb[1].mxu1  ;;  %v316_v25 = vmul.f32 2.0, %v150_v21 }
  0xe2   :  { %v324_v24 = vmul.f32 2.0, %v190_v20  ;;  %v333_v28 = vsub.f32 %v301_v17, %v317_v19 }
  0xe3   :  { %v341_v27 = vsub.f32 %v309_v7, %v325_v18  ;;  %v332_v32 = vsub.f32 %v300_v23, %v316_v25  ;;  %v646_v34 = vpop.f32.mrb[2].mxu0 }
  0xe4   :  { %v340_v31 = vsub.f32 %v308_v14, %v324_v24  ;;  %v658_v33 = vpop.f32.mrb[2].mxu1  ;;  %v904_v39 = vmax.f32 %v333_v28, 0.0  ;;  %v160_v42 = vpop.f32.mrb[3].mxu0  ;;  %v319_v47 = vmul.f32 2.0, %v646_v34 }
  0xe5   :  { %v902_v38 = vmax.f32 %v341_v27, 0.0  ;;  %v200_v41 = vpop.f32.mrb[3].mxu1  ;;  %v909_v44 = vmax.f32 %v332_v32, 0.0  ;;  %v327_v45 = vmul.f32 2.0, %v658_v33  ;;  %v318_v49 = vmul.f32 2.0, %v160_v42 }
  0xe6   :  { %v907_v43 = vmax.f32 %v340_v31, 0.0  ;;  %v326_v48 = vmul.f32 2.0, %v200_v41  ;;  %v335_v2 = vsub.f32 %v303_v52, %v319_v47  ;;  %vm373_vm5 = vcmp.eq.f32.partialorder %v904_v39, inf }
  0xe7   :  { %680 = vrsqrt.f32 %v902_v38  ;;  %v649_v57 = vpop.f32.mrb[4].mxu0  ;;  %vm429_vm2 = vcmp.eq.f32.partialorder %v902_v38, inf  ;;  %v343_v61 = vsub.f32 %v311_v40, %v327_v45  ;;  %v334_v9 = vsub.f32 %v302_v37, %v318_v49 }
  0xe8   :  { %682 = vrsqrt.f32 %v904_v39  ;;  %v661_v55 = vpop.f32.mrb[4].mxu1  ;;  %v170_v0 = vpop.f32.mrb[5].mxu0  ;;  %v342_v7 = vsub.f32 %v310_v46, %v326_v48  ;;  %vm431_vm3 = vcmp.eq.f32.partialorder %v902_v38, 0.0  ;;  %v432_v10 = vand.u32 2147483648, %v902_v38 }
  0xe9   :  { %684 = vrsqrt.f32 %v907_v43  ;;  %v210_v58 = vpop.f32.mrb[5].mxu1  ;;  %v329_v11 = vmul.f32 2.0, %v661_v55  ;;  %v321_v12 = vmul.f32 2.0, %v649_v57  ;;  %v955_v17 = vmax.f32 %v343_v61, 0.0 }
  0xea   :  { %686 = vrsqrt.f32 %v909_v44  ;;  %v957_v18 = vmax.f32 %v335_v2, 0.0  ;;  %v959_v19 = vmax.f32 %v342_v7, 0.0  ;;  %vm375_vm7 = vcmp.eq.f32.partialorder %v904_v39, 0.0 }
  0xeb   :  { %v950_v14 = vpop.f32.mrb[6].mxu0  ;;  %v968_v23 = vmax.f32 %v334_v9, 0.0  ;;  %v328_v24 = vmul.f32 2.0, %v210_v58  ;;  %v320_v25 = vmul.f32 2.0, %v170_v0  ;;  %v376_v27 = vand.u32 2147483648, %v904_v39 }
  0xec   :  { %v948_v4 = vpop.f32.mrb[6].mxu1  ;;  %v963_v21 = vpop.f32.mrb[7].mxu0  ;;  %vm422_vm9 = vcmp.eq.f32.partialorder %v907_v43, inf  ;;  %688 = vrsqrt.f32 %v955_v17  ;;  %v345_v28 = vsub.f32 %v313_v56, %v329_v11  ;;  %vm424_vm10 = vcmp.eq.f32.partialorder %v907_v43, 0.0 }
  0xed   :  { %v961_v20 = vpop.f32.mrb[7].mxu1  ;;  %v425_v31 = vand.u32 2147483648, %v907_v43  ;;  %690 = vrsqrt.f32 %v957_v18  ;;  %v337_v32 = vsub.f32 %v915_v53, %v321_v12  ;;  %vm366_vm11 = vcmp.eq.f32.partialorder %v909_v44, inf }
  0xee   :  { %vm368_vm12 = vcmp.eq.f32.partialorder %v909_v44, 0.0  ;;  %v369_v34 = vand.u32 2147483648, %v909_v44  ;;  %692 = vrsqrt.f32 %v959_v19  ;;  %v344_v41 = vsub.f32 %v933_v59, %v328_v24 }
  0xef   :  { %694 = vrsqrt.f32 %v968_v23  ;;  %v336_v42 = vsub.f32 %v918_v54, %v320_v25  ;;  %vm443_vm14 = vcmp.eq.f32.partialorder %v955_v17, inf  ;;  %v446_v47 = vand.u32 2147483648, %v955_v17 }
  0xf0   :  { %v990_v48 = vmax.f32 %v345_v28, 0.0  ;;  %v390_v52 = vand.u32 2147483648, %v957_v18  ;;  %v1001_v53 = vmax.f32 %v337_v32, 0.0  ;;  %vm436_vm15 = vcmp.eq.f32.partialorder %v959_v19, inf }
  0xf1   :  { %v681_v33 = vpop.eup %680  ;;  %v1025_v0 = vmax.f32 %v344_v41, 0.0  ;;  %v1047_v12 = vmax.f32 %v336_v42, 0.0  ;;  %v383_v28 = vand.u32 2147483648, %v968_v23 }
  0xf2   :  { %v683_v37 = vpop.eup %682  ;;  %v428_v40 = vmul.f32 %v681_v33, %v902_v38  ;;  %696 = vrsqrt.f32 %v990_v48 }
  0xf3   :  { %v685_v45 = vpop.eup %684  ;;  %v372_v46 = vmul.f32 %v683_v37, %v904_v39  ;;  %698 = vrsqrt.f32 %v1001_v53 }
  0xf4   :  { %v687_v49 = vpop.eup %686  ;;  %v430_v50 = vsel %vm429_vm2, %v902_v38, %v428_v40  ;;  %v421_v51 = vmul.f32 %v685_v45, %v907_v43  ;;  %vm389_vm2 = vcmp.eq.f32.partialorder %v957_v18, 0.0  ;;  %700 = vrsqrt.f32 %v1025_v0 }
  0xf5   :  { %v433_v54 = vsel %vm431_vm3, %v432_v10, %v430_v50  ;;  %v374_v55 = vsel %vm373_vm5, %v904_v39, %v372_v46  ;;  %v365_v57 = vmul.f32 %v687_v49, %v909_v44  ;;  %vm438_vm3 = vcmp.eq.f32.partialorder %v959_v19, 0.0 }
  0xf6   :  { %v541_v38 = vsel %vm525_vm1, 0.0, %v433_v54  ;;  %v377_v56 = vsel %vm375_vm7, %v376_v27, %v374_v55  ;;  %v423_v58 = vsel %vm422_vm9, %v907_v43, %v421_v51  ;;  %vm518_vm5 = vcmp.eq.s32.totalorder %v887_v26, %v865_v6  ;;  %v689_v11 = vpop.eup %688 }
  0xf7   :  { %v557_v59 = vsub.f32 0.0, %v541_v38  ;;  %v533_v5 = vsel %vm517_vm4, 0.0, %v377_v56  ;;  %v426_v39 = vsel %vm424_vm10, %v425_v31, %v423_v58  ;;  %v367_v61 = vsel %vm366_vm11, %v909_v44, %v365_v57  ;;  %v691_v13 = vpop.eup %690 }
  0xf8   :  { %v549_v2 = vsub.f32 0.0, %v533_v5  ;;  %v540_v7 = vsel %vm524_vm6, 0.0, %v426_v39  ;;  %v370_v9 = vsel %vm368_vm12, %v369_v34, %v367_v61  ;;  %v439_v10 = vand.u32 2147483648, %v959_v19  ;;  %v693_v25 = vpop.eup %692 }
  0xf9   :  { %573 = vst [vmem:[#allocation2 + $0x48] sm:$0xff] %v557_v59  ;;  %v556_v8 = vsub.f32 0.0, %v540_v7  ;;  %v532_v43 = vsel %vm516_vm8, 0.0, %v370_v9  ;;  %vm529_vm1 = vcmp.eq.s32.totalorder %v890_v29, %v865_v6  ;;  %v442_v24 = vmul.f32 %v689_v11, %v955_v17  ;;  %v695_v31 = vpop.eup %694 }
  0xfa   :  { %565 = vst [vmem:[#allocation2 + $0x8] sm:$0xff] %v549_v2  ;;  %v548_v44 = vsub.f32 0.0, %v532_v43  ;;  %vm380_vm4 = vcmp.eq.f32.partialorder %v968_v23, inf  ;;  %vm382_vm6 = vcmp.eq.f32.partialorder %v968_v23, 0.0  ;;  %v386_v27 = vmul.f32 %v691_v13, %v957_v18 }
  0xfb   :  { %572 = vst [vmem:[#allocation2 + $0x40] sm:$0xff] %v556_v8  ;;  %vm457_vm7 = vcmp.eq.f32.partialorder %v990_v48, inf  ;;  %v444_v32 = vsel %vm443_vm14, %v955_v17, %v442_v24  ;;  %v435_v33 = vmul.f32 %v693_v25, %v959_v19  ;;  %vm459_vm8 = vcmp.eq.f32.partialorder %v990_v48, 0.0 }
  0xfc   :  { %564 = vst [vmem:[#allocation2] sm:$0xff] %v548_v44  ;;  %v460_v34 = vand.u32 2147483648, %v990_v48  ;;  %vm1180_vm9 = vcmp.eq.f32.partialorder %v955_v17, 0.0  ;;  %vm1181_vm10 = vcmp.eq.f32.partialorder %v957_v18, inf  ;;  %v379_v41 = vmul.f32 %v695_v31, %v968_v23  ;;  %v697_v46 = vpop.eup %696 }
  0xfd   :  { %v447_v37 = vsel %vm1180_vm9, %v446_v47, %v444_v32  ;;  %v388_v40 = vsel %vm1181_vm10, %v957_v18, %v386_v27  ;;  %vm521_vm11 = vcmp.eq.s32.totalorder %v893_v30, %v865_v6  ;;  %702 = vrsqrt.f32 %v1047_v12  ;;  %v699_v56 = vpop.eup %698 }
  0xfe   :  { %vm1182_vm12 = vcmp.eq.s32.totalorder %v876_v15, %v865_v6  ;;  %v391_v45 = vsel %vm389_vm2, %v390_v52, %v388_v40  ;;  %v437_v17 = vsel %vm436_vm15, %v959_v19, %v435_v33  ;;  %vm401_vm14 = vcmp.eq.f32.partialorder %v1001_v53, inf  ;;  %v701_v61 = vpop.eup %700 }
  0xff   :  { %v543_v42 = vsel %vm1182_vm12, 0.0, %v447_v37  ;;  %v535_v49 = vsel %vm519_vm13, 0.0, %v391_v45  ;;  %v440_v50 = vsel %vm438_vm3, %v439_v10, %v437_v17  ;;  %v381_v15 = vsel %vm380_vm4, %v968_v23, %v379_v41 }
 0x100   :  { %v559_v47 = vsub.f32 0.0, %v543_v42  ;;  %vm528_vm2 = vcmp.eq.s32.totalorder %v896_v35, %v865_v6  ;;  %v551_v18 = vsub.f32 0.0, %v535_v49  ;;  %v542_v51 = vsel %vm526_vm0, 0.0, %v440_v50 }
 0x101   :  { %v384_v52 = vsel %vm382_vm6, %v383_v28, %v381_v15  ;;  %v456_v16 = vmul.f32 %v697_v46, %v990_v48  ;;  %v558_v19 = vsub.f32 0.0, %v542_v51  ;;  %vm403_vm13 = vcmp.eq.f32.partialorder %v1001_v53, 0.0 }
 0x102   :  { %575 = vst [vmem:[#allocation2 + $0x58] sm:$0xff] %v559_v47  ;;  %v534_v54 = vsel %vm518_vm5, 0.0, %v384_v52  ;;  %v404_v55 = vand.u32 2147483648, %v1001_v53  ;;  %vm520_vm15 = vcmp.eq.s32.totalorder %v899_v36, %v865_v6  ;;  %567 = vst [vmem:[#allocation2 + $0x18] sm:$0xff] %v551_v18  ;;  %v331_v57 = vmul.f32 2.0, %v948_v4 }
 0x103   :  { %v550_v22 = vsub.f32 0.0, %v534_v54  ;;  %v458_v23 = vsel %vm457_vm7, %v990_v48, %v456_v16  ;;  %v323_v38 = vmul.f32 2.0, %v950_v14  ;;  %574 = vst [vmem:[#allocation2 + $0x50] sm:$0xff] %v558_v19  ;;  %vm450_vm0 = vcmp.eq.f32.partialorder %v1025_v0, inf }
 0x104   :  { %v461_v26 = vsel %vm459_vm8, %v460_v34, %v458_v23  ;;  %v330_v58 = vmul.f32 2.0, %v961_v20  ;;  %v322_v59 = vmul.f32 2.0, %v963_v21  ;;  %v400_v4 = vmul.f32 %v699_v56, %v1001_v53 }
 0x105   :  { %566 = vst [vmem:[#allocation2 + $0x10] sm:$0xff] %v550_v22  ;;  %v545_v5 = vsel %vm529_vm1, 0.0, %v461_v26  ;;  %v347_v14 = vsub.f32 %v936_v1, %v331_v57  ;;  %v339_v39 = vsub.f32 %v923_v62, %v323_v38  ;;  %vm452_vm3 = vcmp.eq.f32.partialorder %v1025_v0, 0.0 }
 0x106   :  { %v561_v48 = vsub.f32 0.0, %v545_v5  ;;  %v346_v2 = vsub.f32 %v939_v60, %v330_v58  ;;  %v338_v20 = vsub.f32 %v927_v63, %v322_v59  ;;  %v402_v21 = vsel %vm401_vm14, %v1001_v53, %v400_v4 }
 0x107   :  { %v449_v29 = vmul.f32 %v701_v61, %v1025_v0  ;;  %v363_v7 = vmax.f32 %v347_v14, 0.0  ;;  %v355_v9 = vmax.f32 %v339_v39, 0.0  ;;  %v703_v10 = vpop.eup %702  ;;  %v405_v62 = vsel %vm403_vm13, %v404_v55, %v402_v21 }
 0x108   :  { %577 = vst [vmem:[#allocation2 + $0x68] sm:$0xff] %v561_v48  ;;  %v453_v1 = vand.u32 2147483648, %v1025_v0  ;;  %vm394_vm5 = vcmp.eq.f32.partialorder %v1047_v12, inf  ;;  %v362_v60 = vmax.f32 %v346_v2, 0.0  ;;  %v537_v63 = vsel %vm521_vm11, 0.0, %v405_v62 }
 0x109   :  { %v451_v11 = vsel %vm450_vm0, %v1025_v0, %v449_v29  ;;  %v393_v8 = vmul.f32 %v703_v10, %v1047_v12  ;;  %704 = vrsqrt.f32 %v363_v7  ;;  %v553_v43 = vsub.f32 0.0, %v537_v63 }
 0x10a   :  { %v454_v53 = vsel %vm452_vm3, %v453_v1, %v451_v11  ;;  %v397_v13 = vand.u32 2147483648, %v1047_v12  ;;  %v354_v44 = vmax.f32 %v338_v20, 0.0  ;;  %vm396_vm1 = vcmp.eq.f32.partialorder %v1047_v12, 0.0 }
 0x10b   :  { %v544_v24 = vsel %vm528_vm2, 0.0, %v454_v53  ;;  %v395_v30 = vsel %vm394_vm5, %v1047_v12, %v393_v8  ;;  %706 = vrsqrt.f32 %v355_v9  ;;  %569 = vst [vmem:[#allocation2 + $0x28] sm:$0xff] %v553_v43  ;;  %v493_v35 = vadd.s32 120, %v855_v3 }
 0x10c   :  { %v560_v25 = vsub.f32 0.0, %v544_v24  ;;  %v398_v27 = vsel %vm396_vm1, %v397_v13, %v395_v30  ;;  %708 = vrsqrt.f32 %v362_v60  ;;  %v485_v31 = vadd.s32 56, %v855_v3 }
 0x10d   :  { %v536_v0 = vsel %vm520_vm15, 0.0, %v398_v27  ;;  %710 = vrsqrt.f32 %v354_v44  ;;  %v492_v32 = vadd.s32 112, %v855_v3  ;;  %v484_v12 = vadd.s32 48, %v855_v3 }
 0x10e   :  { %576 = vst [vmem:[#allocation2 + $0x60] sm:$0xff] %v560_v25  ;;  %v552_v28 = vsub.f32 0.0, %v536_v0  ;;  %vm531_vm4 = vcmp.eq.s32.totalorder %v493_v35, %v865_v6  ;;  %vm523_vm6 = vcmp.eq.s32.totalorder %v485_v31, %v865_v6  ;;  %vm471_vm7 = vcmp.eq.f32.partialorder %v363_v7, inf }
 0x10f   :  { %v474_v37 = vand.u32 2147483648, %v363_v7  ;;  %vm530_vm8 = vcmp.eq.s32.totalorder %v492_v32, %v865_v6  ;;  %vm522_vm9 = vcmp.eq.s32.totalorder %v484_v12, %v865_v6  ;;  %vm473_vm10 = vcmp.eq.f32.partialorder %v363_v7, 0.0 }
 0x110   :  { %568 = vst [vmem:[#allocation2 + $0x20] sm:$0xff] %v552_v28  ;;  %vm415_vm11 = vcmp.eq.f32.partialorder %v355_v9, inf  ;;  %vm417_vm12 = vcmp.eq.f32.partialorder %v355_v9, 0.0  ;;  %v418_v3 = vand.u32 2147483648, %v355_v9  ;;  %vm464_vm14 = vcmp.eq.f32.partialorder %v362_v60, inf }
 0x111   :  { %vm466_vm2 = vcmp.eq.f32.partialorder %v362_v60, 0.0  ;;  %v467_v18 = vand.u32 2147483648, %v362_v60  ;;  %vm408_vm13 = vcmp.eq.f32.partialorder %v354_v44, inf  ;;  %v411_v19 = vand.u32 2147483648, %v354_v44 }
 0x112   :  { %vm410_vm15 = vcmp.eq.f32.partialorder %v354_v44, 0.0 }
 0x113   :  { %v705_v33 = vpop.eup %704 }
 0x114   :  { %v470_v34 = vmul.f32 %v705_v33, %v363_v7 }
 0x115   :  { %v707_v36 = vpop.eup %706 }
 0x116   :  { %v472_v40 = vsel %vm471_vm7, %v363_v7, %v470_v34  ;;  %v414_v41 = vmul.f32 %v707_v36, %v355_v9  ;;  %v709_v42 = vpop.eup %708 }
 0x117   :  { %v475_v45 = vsel %vm473_vm10, %v474_v37, %v472_v40  ;;  %v711_v17 = vpop.eup %710  ;;  %v463_v49 = vmul.f32 %v709_v42, %v362_v60 }
 0x118   :  { %v547_v46 = vsel %vm531_vm4, 0.0, %v475_v45  ;;  %v416_v47 = vsel %vm415_vm11, %v355_v9, %v414_v41  ;;  %v407_v51 = vmul.f32 %v711_v17, %v354_v44 }
 0x119   :  { %v563_v50 = vsub.f32 0.0, %v547_v46  ;;  %v419_v15 = vsel %vm417_vm12, %v418_v3, %v416_v47  ;;  %v465_v16 = vsel %vm464_vm14, %v362_v60, %v463_v49 }
 0x11a   :  { %v539_v52 = vsel %vm523_vm6, 0.0, %v419_v15  ;;  %v468_v55 = vsel %vm466_vm2, %v467_v18, %v465_v16  ;;  %v409_v22 = vsel %vm408_vm13, %v354_v44, %v407_v51 }
 0x11b   :  { %579 = vst [vmem:[#allocation2 + $0x78] sm:$0xff] %v563_v50  ;;  %v555_v54 = vsub.f32 0.0, %v539_v52  ;;  %v546_v23 = vsel %vm530_vm8, 0.0, %v468_v55  ;;  %v412_v57 = vsel %vm410_vm15, %v411_v19, %v409_v22 }
 0x11c   :  { %v562_v38 = vsub.f32 0.0, %v546_v23  ;;  %v538_v56 = vsel %vm522_vm9, 0.0, %v412_v57 }
 0x11d   :  { %571 = vst [vmem:[#allocation2 + $0x38] sm:$0xff] %v555_v54  ;;  %v554_v26 = vsub.f32 0.0, %v538_v56 }
 0x11e   :  { %578 = vst [vmem:[#allocation2 + $0x70] sm:$0xff] %v562_v38 }
 0x11f   :  { %570 = vst [vmem:[#allocation2 + $0x30] sm:$0xff] %v554_v26 }
 0x120   :  { %723 = shalt.err (!%p720_p4)
}
 0x121   :  { %s724_s28 = scalar_lea.hbm %s1179_s3, 2048 }
 0x122   :  { %p725_p5 = scmp.ne.s32.totalorder %s1179_s3, %s724_s28  ;;  %p728_p6 = scmp.lt.u32.totalorder %s724_s28, %s1179_s3 }
 0x124   :  { %p730_p7 = pnand %p728_p6, %p725_p5 }
 0x126   :  { %733 = shalt.err (!%p730_p7)
}
 0x127   :  { %s737_s6 = smov 128   ;;  %s738_s7 = smov 8  }
 0x128   :  { %591 = dma.vmem_to_hbm [thread:$0]  %s586_s25, 2048, %s1179_s3, [#allocation3], %s737_s6, %s737_s6, %s738_s7  }
 0x129   :  { %734 = dma.done.wait [#allocation3], 2048  }
 0x12a   :  { %735 = vsyncadd [#allocation3], 4294965248 }
 0x12b   :  { %595 = vsyncpa [#allocation3], 1 }

</bundles_post_ra>
